<compile_context>
chip_gen: v5e
topology: v5e:2x2
jax: 0.10.0
libtpu: 0.0.40
codegen_flags: <defaults>
</compile_context>

<pallas_src>
import functools
import math

import jax
import jax.numpy as jnp
from jax.experimental import pallas as pl
from jax.experimental.pallas import tpu as pltpu


# ---------------------------------------------------------------------------
# Kernel 1: per-batch K/V projection into head-major (H, S, hd) bf16 slabs.
# ---------------------------------------------------------------------------
def kv_proj_kernel(x_ref, wk_ref, bk_ref, wv_ref, bv_ref, k_ref, v_ref,
                   *, num_heads):
    H = num_heads
    D = x_ref.shape[2]
    hd = D // H
    x = x_ref[0]                                                  # (S, D) bf16
    k = jnp.dot(x, wk_ref[...], preferred_element_type=jnp.float32) + bk_ref[...]
    v = jnp.dot(x, wv_ref[...], preferred_element_type=jnp.float32) + bv_ref[...]
    k = k.astype(jnp.bfloat16)
    v = v.astype(jnp.bfloat16)
    # Head split happens exactly once per batch element here (not per q-tile).
    k_ref[0] = jnp.stack([k[:, h * hd:(h + 1) * hd] for h in range(H)], axis=0)
    v_ref[0] = jnp.stack([v[:, h * hd:(h + 1) * hd] for h in range(H)], axis=0)


# ---------------------------------------------------------------------------
# Kernel 2: attention + residual/LN1 + FFN + residual/LN2, per (batch, q-tile).
# ---------------------------------------------------------------------------
def encoder_layer_kernel(
    xq_ref, k_ref, v_ref, mask_ref,
    wq_ref, bq_ref, wo_ref, bo_ref,
    g1_ref, be1_ref,
    w1_ref, bf1_ref, w2_ref, bf2_ref,
    g2_ref, be2_ref,
    o_ref,
    *, num_heads, eps,
):
    tS, D = xq_ref.shape[1], xq_ref.shape[2]
    H = num_heads
    hd = D // H

    x_bf = xq_ref[0]                                              # (tS, D) bf16

    # Q projection: one full-width MXU matmul; 1/sqrt(hd) already folded into
    # wq / bq on the host, so no per-step score scaling is needed.
    q = jnp.dot(x_bf, wq_ref[...], preferred_element_type=jnp.float32)
    q = (q + bq_ref[...]).astype(jnp.bfloat16)                    # (tS, D)

    # Head-batched attention. K/V arrive head-major (H, S, hd) bf16 — no
    # per-tile re-stacking.  The Q stack / value concat below touch only the
    # small (tS, D) tile (could also be a pltpu.einshape relayout).
    qh = jnp.stack([q[:, h * hd:(h + 1) * hd] for h in range(H)], axis=0)
    kh = k_ref[0]                                                 # (H, S, hd)
    vh = v_ref[0]                                                 # (H, S, hd)

    # TODO(synk): for very long S, chunk K/V along S with an online-softmax
    # (flash, P3) loop to bound the (H, tS, S) score tensor on v7x.
    s = jnp.einsum("hqd,hkd->hqk", qh, kh,
                   preferred_element_type=jnp.float32)            # (H, tS, S)
    s = s + mask_ref[...]                                         # additive mask
    s = s - jnp.max(s, axis=-1, keepdims=True)
    p = jnp.exp(s)
    p = p * pl.reciprocal(jnp.sum(p, axis=-1, keepdims=True), approx=True)
    vals = jnp.einsum("hqk,hkd->hqd", p.astype(jnp.bfloat16), vh,
                      preferred_element_type=jnp.float32)         # (H, tS, hd)
    values = jnp.concatenate([vals[h] for h in range(H)], axis=-1)  # (tS, D)

    attn = jnp.dot(values.astype(jnp.bfloat16), wo_ref[...],
                   preferred_element_type=jnp.float32) + bo_ref[...]

    # dropout1 / dropout2 are identity at inference.

    # ---- residual + LayerNorm 1 (f32) --------------------------------------
    x1 = attn + x_bf.astype(jnp.float32)
    mean1 = jnp.mean(x1, axis=-1, keepdims=True)
    var1 = jnp.mean((x1 - mean1) ** 2, axis=-1, keepdims=True)
    x1n = g1_ref[...] * ((x1 - mean1) * jax.lax.rsqrt(var1 + eps)) + be1_ref[...]

    # ---- position-wise feed-forward -----------------------------------------
    # TODO(synk): for very large ffn_hidden, stream W1/W2 from HBM
    # (memory_space=pl.ANY + pltpu.emit_pipeline over F-chunks).
    h1 = jnp.dot(x1n.astype(jnp.bfloat16), w1_ref[...],
                 preferred_element_type=jnp.float32) + bf1_ref[...]
    h1 = jnp.maximum(h1, 0.0)
    ffn = jnp.dot(h1.astype(jnp.bfloat16), w2_ref[...],
                  preferred_element_type=jnp.float32) + bf2_ref[...]

    # ---- residual + LayerNorm 2 (f32) ---------------------------------------
    x2 = ffn + x1n
    mean2 = jnp.mean(x2, axis=-1, keepdims=True)
    var2 = jnp.mean((x2 - mean2) ** 2, axis=-1, keepdims=True)
    o_ref[0] = (g2_ref[...] * ((x2 - mean2) * jax.lax.rsqrt(var2 + eps))
                + be2_ref[...]).astype(o_ref.dtype)


# ---------------------------------------------------------------------------
# Host-side helpers / wrapper.
# ---------------------------------------------------------------------------
def _vmem_limit_bytes():
    # Per-generation budget with headroom (~54 MiB on v7x, ~108 MiB on
    # v5e/v6e) instead of a hard-coded 64 MiB.
    try:
        cap = pltpu.get_tpu_info().vmem_capacity_bytes
    except Exception:
        cap = 128 * 1024 * 1024
    return int(cap * 0.85)


def _pick_q_tile(seq_len, max_tile):
    """Largest multiple-of-8 divisor of seq_len that is <= max_tile."""
    if seq_len <= max_tile:
        return seq_len
    best = None
    for t in range(8, max_tile + 1, 8):
        if seq_len % t == 0:
            best = t
    # TODO(synk): odd/prime S falls back to the full sequence, which may exceed
    # the VMEM budget for very long S; pad S upstream if that matters.
    return best if best is not None else seq_len


def encoder_layer(x, mask, params, *, num_heads, eps=1e-5, max_q_tile=None):
    B, S, D = x.shape
    F = params["w1"].shape[1]
    H = num_heads
    hd = D // H
    scale = 1.0 / math.sqrt(hd)

    vmem_limit = _vmem_limit_bytes()
    if max_q_tile is None:
        # Larger tiles on 128 MiB parts (v5e/v6e), smaller on v7x (64 MiB).
        max_q_tile = 512 if vmem_limit > 96 * 1024 * 1024 else 256
    tS = _pick_q_tile(S, max_q_tile)
    nq = S // tS

    # One-time host-side weight repack:
    #  * fused torch qkv columns -> head-major Q / K / V slabs,
    #  * 1/sqrt(hd) softmax scale folded into Wq, bq,
    #  * matmul weights cast to bf16 (biases / LN params stay f32).
    wr = params["wqkv"].reshape(D, H, 3, hd)
    br = params["bqkv"].reshape(1, H, 3, hd)
    wq = (wr[:, :, 0, :].reshape(D, D) * scale).astype(jnp.bfloat16)
    wk = wr[:, :, 1, :].reshape(D, D).astype(jnp.bfloat16)
    wv = wr[:, :, 2, :].reshape(D, D).astype(jnp.bfloat16)
    bq = br[:, :, 0, :].reshape(1, D) * scale
    bk = br[:, :, 1, :].reshape(1, D)
    bv = br[:, :, 2, :].reshape(1, D)
    wo = params["wo"].astype(jnp.bfloat16)
    w1 = params["w1"].astype(jnp.bfloat16)
    w2 = params["w2"].astype(jnp.bfloat16)

    # Activations / mask cross the pallas_call boundary as bf16.
    x_bf = x.astype(jnp.bfloat16)
    mask_bf = mask.astype(jnp.bfloat16)

    def run(single_buffer_consts):
        def _const(shape, index_map):
            kwargs = {}
            if single_buffer_consts:
                kwargs["pipeline_mode"] = pl.Buffered(1)
            return pl.BlockSpec(shape, index_map, **kwargs)

        const1 = lambda shape: _const(shape, lambda bi: (0,) * len(shape))
        const2 = lambda shape: _const(shape, lambda bi, qi: (0,) * len(shape))

        # ---- K/V projection (per batch element) -----------------------------
        kv_call = pl.pallas_call(
            functools.partial(kv_proj_kernel, num_heads=H),
            out_shape=(jax.ShapeDtypeStruct((B, H, S, hd), jnp.bfloat16),
                       jax.ShapeDtypeStruct((B, H, S, hd), jnp.bfloat16)),
            grid_spec=pltpu.PrefetchScalarGridSpec(
                num_scalar_prefetch=0,
                grid=(B,),
                in_specs=[
                    pl.BlockSpec((1, S, D), lambda bi: (bi, 0, 0)),
                    const1((D, D)),      # Wk (head-major)
                    const1((1, D)),      # bk
                    const1((D, D)),      # Wv (head-major)
                    const1((1, D)),      # bv
                ],
                out_specs=(pl.BlockSpec((1, H, S, hd), lambda bi: (bi, 0, 0, 0)),
                           pl.BlockSpec((1, H, S, hd), lambda bi: (bi, 0, 0, 0))),
            ),
            compiler_params=pltpu.CompilerParams(
                dimension_semantics=("parallel",),
                vmem_limit_bytes=vmem_limit),
            cost_estimate=pl.CostEstimate(
                flops=4 * B * S * D * D,
                transcendentals=0,
                bytes_accessed=3 * B * S * D * 2 + 4 * D * D * 2),
        )
        k_hm, v_hm = kv_call(x_bf, wk, bk, wv, bv)

        # ---- main encoder-layer kernel ---------------------------------------
        flops = (2 * B * S * D * D          # Q projection
                 + 4 * B * S * S * D        # scores + attn @ V (all heads)
                 + 2 * B * S * D * D        # output projection
                 + 4 * B * S * D * F)       # FFN
        main_call = pl.pallas_call(
            functools.partial(encoder_layer_kernel, num_heads=H, eps=eps),
            out_shape=jax.ShapeDtypeStruct((B, S, D), jnp.float32),
            grid_spec=pltpu.PrefetchScalarGridSpec(
                num_scalar_prefetch=0,
                grid=(B, nq),
                in_specs=[
                    pl.BlockSpec((1, tS, D), lambda bi, qi: (bi, qi, 0)),       # x q-tile
                    pl.BlockSpec((1, H, S, hd), lambda bi, qi: (bi, 0, 0, 0)),  # K
                    pl.BlockSpec((1, H, S, hd), lambda bi, qi: (bi, 0, 0, 0)),  # V
                    pl.BlockSpec((tS, S), lambda bi, qi: (qi, 0)),              # mask rows
                    const2((D, D)),      # Wq (scale folded)
                    const2((1, D)),      # bq (scale folded)
                    const2((D, D)),      # Wo
                    const2((1, D)),      # bo
                    const2((1, D)),      # gamma1
                    const2((1, D)),      # beta1
                    const2((D, F)),      # W1
                    const2((1, F)),      # b1
                    const2((F, D)),      # W2
                    const2((1, D)),      # b2
                    const2((1, D)),      # gamma2
                    const2((1, D)),      # beta2
                ],
                out_specs=pl.BlockSpec((1, tS, D), lambda bi, qi: (bi, qi, 0)),
            ),
            compiler_params=pltpu.CompilerParams(
                # No carried scratch -> both grid axes are megacore-shardable.
                dimension_semantics=("parallel", "parallel"),
                vmem_limit_bytes=vmem_limit),
            cost_estimate=pl.CostEstimate(
                flops=flops,
                transcendentals=B * H * S * S,
                bytes_accessed=(3 * B * S * D * 2 + B * S * D * 4 + S * S * 2
                                + 2 * D * D * 2 + 2 * D * F * 2)),
        )
        return main_call(
            x_bf, k_hm, v_hm, mask_bf,
            wq, bq, wo, params["bo"],
            params["gamma1"], params["beta1"],
            w1, params["b1"], w2, params["b2"],
            params["gamma2"], params["beta2"])

    try:
        # Single-buffer grid-invariant weight/bias/LN blocks (halves resident
        # weight VMEM; critical on v7x's 64 MiB).
        return run(single_buffer_consts=True)
    except Exception:
        # Fallback for jax versions that reject pl.Buffered(1) on pallas_call.
        return run(single_buffer_consts=False)


# ---------------------------------------------------------------------------
# Pure-JAX reference (matches the PyTorch module, f32 everywhere).
# ---------------------------------------------------------------------------
def encoder_layer_ref(x, mask, params, *, num_heads, eps=1e-5):
    B, S, D = x.shape
    H = num_heads
    hd = D // H
    qkv = x @ params["wqkv"] + params["bqkv"]
    qkv = qkv.reshape(B, S, H, 3 * hd).transpose(0, 2, 1, 3)
    q, k, v = jnp.split(qkv, 3, axis=-1)
    s = (q @ jnp.swapaxes(k, -1, -2)) / math.sqrt(hd)
    s = s + mask
    a = jax.nn.softmax(s, axis=-1)
    vals = (a @ v).transpose(0, 2, 1, 3).reshape(B, S, D)
    attn = vals @ params["wo"] + params["bo"]

    def ln(z, g, b):
        m = z.mean(-1, keepdims=True)
        var = ((z - m) ** 2).mean(-1, keepdims=True)
        return g * ((z - m) / jnp.sqrt(var + eps)) + b

    x1 = ln(attn + x, params["gamma1"], params["beta1"])
    h = jnp.maximum(x1 @ params["w1"] + params["b1"], 0.0)
    ffn = h @ params["w2"] + params["b2"]
    return ln(ffn + x1, params["gamma2"], params["beta2"])


def init_params(key, d_model, ffn_hidden, num_heads):
    ks = jax.random.split(key, 8)
    s = 0.02
    return {
        "wqkv": s * jax.random.normal(ks[0], (d_model, 3 * d_model), jnp.float32),
        "bqkv": s * jax.random.normal(ks[1], (1, 3 * d_model), jnp.float32),
        "wo":   s * jax.random.normal(ks[2], (d_model, d_model), jnp.float32),
        "bo":   s * jax.random.normal(ks[3], (1, d_model), jnp.float32),
        "w1":   s * jax.random.normal(ks[4], (d_model, ffn_hidden), jnp.float32),
        "b1":   s * jax.random.normal(ks[5], (1, ffn_hidden), jnp.float32),
        "w2":   s * jax.random.normal(ks[6], (ffn_hidden, d_model), jnp.float32),
        "b2":   s * jax.random.normal(ks[7], (1, d_model), jnp.float32),
        "gamma1": jnp.ones((1, d_model), jnp.float32),
        "beta1":  jnp.zeros((1, d_model), jnp.float32),
        "gamma2": jnp.ones((1, d_model), jnp.float32),
        "beta2":  jnp.zeros((1, d_model), jnp.float32),
    }


if __name__ == "__main__":
    B, S, d_model, num_heads, ffn_hidden = 2, 8, 32, 4, 64

    key = jax.random.PRNGKey(0)
    kx, kp = jax.random.split(key)
    x = jax.random.normal(kx, (B, S, d_model), jnp.float32)

    # Additive attention mask (causal); shape (S, S) broadcasts over batch and
    # heads exactly like the torch permute(1,0,2,3)+mask path.
    mask = jnp.where(jnp.tril(jnp.ones((S, S), jnp.bool_)), 0.0, -1e9)
    mask = mask.astype(jnp.float32)

    params = init_params(kp, d_model, ffn_hidden, num_heads)

    out = encoder_layer(x, mask, params, num_heads=num_heads)
    jax.block_until_ready(out)
    assert out.shape == (B, S, d_model)

    ref = encoder_layer_ref(x, mask, params, num_heads=num_heads)
    err = float(jnp.max(jnp.abs(out - ref)))
    # bf16 matmul operands + approx softmax reciprocal => loose tolerance.
    assert err < 0.1, f"max abs err vs reference: {err}"
    print("KERNEL_OK")
</pallas_src>

<mosaic_0001>
module attributes {stable_mosaic.version = 11 : i64} {
  func.func @kv_proj_kernel(%arg0: i32, %arg1: memref<1x8x32xbf16, #tpu.memory_space<vmem>>, %arg2: memref<32x32xbf16, #tpu.memory_space<vmem>>, %arg3: memref<1x32xf32, #tpu.memory_space<vmem>>, %arg4: memref<32x32xbf16, #tpu.memory_space<vmem>>, %arg5: memref<1x32xf32, #tpu.memory_space<vmem>>, %arg6: memref<1x4x8x8xbf16, #tpu.memory_space<vmem>>, %arg7: memref<1x4x8x8xbf16, #tpu.memory_space<vmem>>) attributes {dimension_semantics = [#tpu.dimension_semantics<parallel>], iteration_bounds = array<i64: 2>, scalar_prefetch = 0 : i64, scratch_operands = 0 : i64, tpu.core_type = #tpu.core_type<tc>, window_params = [{transform_indices = @transform_0, window_bounds = array<i64: 1, 8, 32>}, {pipeline_mode = #tpu.pipeline_mode<synchronous>, transform_indices = @transform_1, window_bounds = array<i64: 32, 32>}, {pipeline_mode = #tpu.pipeline_mode<synchronous>, transform_indices = @transform_2, window_bounds = array<i64: 1, 32>}, {pipeline_mode = #tpu.pipeline_mode<synchronous>, transform_indices = @transform_3, window_bounds = array<i64: 32, 32>}, {pipeline_mode = #tpu.pipeline_mode<synchronous>, transform_indices = @transform_4, window_bounds = array<i64: 1, 32>}, {transform_indices = @transform_5, window_bounds = array<i64: 1, 4, 8, 8>}, {transform_indices = @transform_6, window_bounds = array<i64: 1, 4, 8, 8>}]} {
    %c0 = arith.constant 0 : index
    %c0_0 = arith.constant 0 : index
    %c0_1 = arith.constant 0 : index
    %0 = vector.load %arg1[%c0, %c0_0, %c0_1] : memref<1x8x32xbf16, #tpu.memory_space<vmem>>, vector<1x8x32xbf16>
    %1 = vector.shape_cast %0 : vector<1x8x32xbf16> to vector<8x32xbf16>
    %c0_2 = arith.constant 0 : index
    %c0_3 = arith.constant 0 : index
    %2 = vector.load %arg2[%c0_2, %c0_3] : memref<32x32xbf16, #tpu.memory_space<vmem>>, vector<32x32xbf16>
    %cst = arith.constant dense<0.000000e+00> : vector<8x32xf32>
    %3 = tpu.matmul %1, %2, %cst {dimension_numbers = #tpu.dot_dimension_numbers<[1], [0], [0], [1], [0, 0, 1, 1], [], []>} : vector<8x32xbf16>, vector<32x32xbf16>, vector<8x32xf32> -> vector<8x32xf32>
    %c0_4 = arith.constant 0 : index
    %c0_5 = arith.constant 0 : index
    %4 = vector.load %arg3[%c0_4, %c0_5] : memref<1x32xf32, #tpu.memory_space<vmem>>, vector<1x32xf32>
    %5 = vector.broadcast %4 : vector<1x32xf32> to vector<8x32xf32>
    %6 = arith.addf %3, %5 : vector<8x32xf32>
    %c0_6 = arith.constant 0 : index
    %c0_7 = arith.constant 0 : index
    %7 = vector.load %arg4[%c0_6, %c0_7] : memref<32x32xbf16, #tpu.memory_space<vmem>>, vector<32x32xbf16>
    %cst_8 = arith.constant dense<0.000000e+00> : vector<8x32xf32>
    %8 = tpu.matmul %1, %7, %cst_8 {dimension_numbers = #tpu.dot_dimension_numbers<[1], [0], [0], [1], [0, 0, 1, 1], [], []>} : vector<8x32xbf16>, vector<32x32xbf16>, vector<8x32xf32> -> vector<8x32xf32>
    %c0_9 = arith.constant 0 : index
    %c0_10 = arith.constant 0 : index
    %9 = vector.load %arg5[%c0_9, %c0_10] : memref<1x32xf32, #tpu.memory_space<vmem>>, vector<1x32xf32>
    %10 = vector.broadcast %9 : vector<1x32xf32> to vector<8x32xf32>
    %11 = arith.addf %8, %10 : vector<8x32xf32>
    %12 = arith.truncf %6 : vector<8x32xf32> to vector<8x32xbf16>
    %13 = arith.truncf %11 : vector<8x32xf32> to vector<8x32xbf16>
    %14 = vector.extract_strided_slice %12 {offsets = [0, 0], sizes = [8, 8], strides = [1, 1]} : vector<8x32xbf16> to vector<8x8xbf16>
    %15 = vector.extract_strided_slice %12 {offsets = [0, 8], sizes = [8, 8], strides = [1, 1]} : vector<8x32xbf16> to vector<8x8xbf16>
    %16 = vector.extract_strided_slice %12 {offsets = [0, 16], sizes = [8, 8], strides = [1, 1]} : vector<8x32xbf16> to vector<8x8xbf16>
    %17 = vector.extract_strided_slice %12 {offsets = [0, 24], sizes = [8, 8], strides = [1, 1]} : vector<8x32xbf16> to vector<8x8xbf16>
    %18 = vector.shape_cast %14 : vector<8x8xbf16> to vector<1x8x8xbf16>
    %19 = vector.shape_cast %15 : vector<8x8xbf16> to vector<1x8x8xbf16>
    %20 = vector.shape_cast %16 : vector<8x8xbf16> to vector<1x8x8xbf16>
    %21 = vector.shape_cast %17 : vector<8x8xbf16> to vector<1x8x8xbf16>
    %22 = tpu.concatenate %18, %19, %20, %21 in 0 : vector<1x8x8xbf16>, vector<1x8x8xbf16>, vector<1x8x8xbf16>, vector<1x8x8xbf16> -> vector<4x8x8xbf16>
    %c0_11 = arith.constant 0 : index
    %c0_12 = arith.constant 0 : index
    %c0_13 = arith.constant 0 : index
    %c0_14 = arith.constant 0 : index
    %23 = vector.load %arg6[%c0_11, %c0_12, %c0_13, %c0_14] : memref<1x4x8x8xbf16, #tpu.memory_space<vmem>>, vector<1x4x8x8xbf16>
    %24 = vector.shape_cast %23 : vector<1x4x8x8xbf16> to vector<4x8x8xbf16>
    %25 = vector.shape_cast %22 : vector<4x8x8xbf16> to vector<1x4x8x8xbf16>
    tpu.vector_store %arg6[%c0_11, %c0_12, %c0_13, %c0_14], %25 {strides = array<i32>} : memref<1x4x8x8xbf16, #tpu.memory_space<vmem>>, vector<1x4x8x8xbf16>,
    %26 = vector.extract_strided_slice %13 {offsets = [0, 0], sizes = [8, 8], strides = [1, 1]} : vector<8x32xbf16> to vector<8x8xbf16>
    %27 = vector.extract_strided_slice %13 {offsets = [0, 8], sizes = [8, 8], strides = [1, 1]} : vector<8x32xbf16> to vector<8x8xbf16>
    %28 = vector.extract_strided_slice %13 {offsets = [0, 16], sizes = [8, 8], strides = [1, 1]} : vector<8x32xbf16> to vector<8x8xbf16>
    %29 = vector.extract_strided_slice %13 {offsets = [0, 24], sizes = [8, 8], strides = [1, 1]} : vector<8x32xbf16> to vector<8x8xbf16>
    %30 = vector.shape_cast %26 : vector<8x8xbf16> to vector<1x8x8xbf16>
    %31 = vector.shape_cast %27 : vector<8x8xbf16> to vector<1x8x8xbf16>
    %32 = vector.shape_cast %28 : vector<8x8xbf16> to vector<1x8x8xbf16>
    %33 = vector.shape_cast %29 : vector<8x8xbf16> to vector<1x8x8xbf16>
    %34 = tpu.concatenate %30, %31, %32, %33 in 0 : vector<1x8x8xbf16>, vector<1x8x8xbf16>, vector<1x8x8xbf16>, vector<1x8x8xbf16> -> vector<4x8x8xbf16>
    %c0_15 = arith.constant 0 : index
    %c0_16 = arith.constant 0 : index
    %c0_17 = arith.constant 0 : index
    %c0_18 = arith.constant 0 : index
    %35 = vector.load %arg7[%c0_15, %c0_16, %c0_17, %c0_18] : memref<1x4x8x8xbf16, #tpu.memory_space<vmem>>, vector<1x4x8x8xbf16>
    %36 = vector.shape_cast %35 : vector<1x4x8x8xbf16> to vector<4x8x8xbf16>
    %37 = vector.shape_cast %34 : vector<4x8x8xbf16> to vector<1x4x8x8xbf16>
    tpu.vector_store %arg7[%c0_15, %c0_16, %c0_17, %c0_18], %37 {strides = array<i32>} : memref<1x4x8x8xbf16, #tpu.memory_space<vmem>>, vector<1x4x8x8xbf16>,
    return
  }
  func.func @transform_0(%arg0: i32) -> (i32, i32, i32) {
    %c0_i32 = arith.constant 0 : i32
    %c0_i32_0 = arith.constant 0 : i32
    %c0_i32_1 = arith.constant 0 : i32
    return %arg0, %c0_i32, %c0_i32_0 : i32, i32, i32
  }
  func.func @transform_1(%arg0: i32) -> (i32, i32) {
    %c0_i32 = arith.constant 0 : i32
    %c0_i32_0 = arith.constant 0 : i32
    %c0_i32_1 = arith.constant 0 : i32
    return %c0_i32, %c0_i32_0 : i32, i32
  }
  func.func @transform_2(%arg0: i32) -> (i32, i32) {
    %c0_i32 = arith.constant 0 : i32
    %c0_i32_0 = arith.constant 0 : i32
    %c0_i32_1 = arith.constant 0 : i32
    return %c0_i32, %c0_i32_0 : i32, i32
  }
  func.func @transform_3(%arg0: i32) -> (i32, i32) {
    %c0_i32 = arith.constant 0 : i32
    %c0_i32_0 = arith.constant 0 : i32
    %c0_i32_1 = arith.constant 0 : i32
    return %c0_i32, %c0_i32_0 : i32, i32
  }
  func.func @transform_4(%arg0: i32) -> (i32, i32) {
    %c0_i32 = arith.constant 0 : i32
    %c0_i32_0 = arith.constant 0 : i32
    %c0_i32_1 = arith.constant 0 : i32
    return %c0_i32, %c0_i32_0 : i32, i32
  }
  func.func @transform_5(%arg0: i32) -> (i32, i32, i32, i32) {
    %c0_i32 = arith.constant 0 : i32
    %c0_i32_0 = arith.constant 0 : i32
    %c0_i32_1 = arith.constant 0 : i32
    %c0_i32_2 = arith.constant 0 : i32
    return %arg0, %c0_i32, %c0_i32_0, %c0_i32_1 : i32, i32, i32, i32
  }
  func.func @transform_6(%arg0: i32) -> (i32, i32, i32, i32) {
    %c0_i32 = arith.constant 0 : i32
    %c0_i32_0 = arith.constant 0 : i32
    %c0_i32_1 = arith.constant 0 : i32
    %c0_i32_2 = arith.constant 0 : i32
    return %arg0, %c0_i32, %c0_i32_0, %c0_i32_1 : i32, i32, i32, i32
  }
}

module attributes {stable_mosaic.version = 11 : i64} {
  func.func @kv_proj_kernel(%arg0: i32, %arg1: memref<1x8x32xbf16, #tpu.memory_space<vmem>>, %arg2: memref<32x32xbf16, #tpu.memory_space<vmem>>, %arg3: memref<1x32xf32, #tpu.memory_space<vmem>>, %arg4: memref<32x32xbf16, #tpu.memory_space<vmem>>, %arg5: memref<1x32xf32, #tpu.memory_space<vmem>>, %arg6: memref<1x4x8x8xbf16, #tpu.memory_space<vmem>>, %arg7: memref<1x4x8x8xbf16, #tpu.memory_space<vmem>>) attributes {dimension_semantics = [#tpu.dimension_semantics<parallel>], iteration_bounds = array<i64: 2>, scalar_prefetch = 0 : i64, scratch_operands = 0 : i64, tpu.core_type = #tpu.core_type<tc>, window_params = [{transform_indices = @transform_0, window_bounds = array<i64: 1, 8, 32>}, {pipeline_mode = #tpu.pipeline_mode<synchronous>, transform_indices = @transform_1, window_bounds = array<i64: 32, 32>}, {pipeline_mode = #tpu.pipeline_mode<synchronous>, transform_indices = @transform_2, window_bounds = array<i64: 1, 32>}, {pipeline_mode = #tpu.pipeline_mode<synchronous>, transform_indices = @transform_3, window_bounds = array<i64: 32, 32>}, {pipeline_mode = #tpu.pipeline_mode<synchronous>, transform_indices = @transform_4, window_bounds = array<i64: 1, 32>}, {transform_indices = @transform_5, window_bounds = array<i64: 1, 4, 8, 8>}, {transform_indices = @transform_6, window_bounds = array<i64: 1, 4, 8, 8>}]} {
    %c0 = arith.constant 0 : index
    %c0_0 = arith.constant 0 : index
    %c0_1 = arith.constant 0 : index
    %0 = vector.load %arg1[%c0, %c0_0, %c0_1] : memref<1x8x32xbf16, #tpu.memory_space<vmem>>, vector<1x8x32xbf16>
    %1 = vector.shape_cast %0 : vector<1x8x32xbf16> to vector<8x32xbf16>
    %c0_2 = arith.constant 0 : index
    %c0_3 = arith.constant 0 : index
    %2 = vector.load %arg2[%c0_2, %c0_3] : memref<32x32xbf16, #tpu.memory_space<vmem>>, vector<32x32xbf16>
    %cst = arith.constant dense<0.000000e+00> : vector<8x32xf32>
    %3 = tpu.matmul %1, %2, %cst {dimension_numbers = #tpu.dot_dimension_numbers<[1], [0], [0], [1], [0, 0, 1, 1], [], []>} : vector<8x32xbf16>, vector<32x32xbf16>, vector<8x32xf32> -> vector<8x32xf32>
    %c0_4 = arith.constant 0 : index
    %c0_5 = arith.constant 0 : index
    %4 = vector.load %arg3[%c0_4, %c0_5] : memref<1x32xf32, #tpu.memory_space<vmem>>, vector<1x32xf32>
    %5 = vector.broadcast %4 : vector<1x32xf32> to vector<8x32xf32>
    %6 = arith.addf %3, %5 : vector<8x32xf32>
    %c0_6 = arith.constant 0 : index
    %c0_7 = arith.constant 0 : index
    %7 = vector.load %arg4[%c0_6, %c0_7] : memref<32x32xbf16, #tpu.memory_space<vmem>>, vector<32x32xbf16>
    %cst_8 = arith.constant dense<0.000000e+00> : vector<8x32xf32>
    %8 = tpu.matmul %1, %7, %cst_8 {dimension_numbers = #tpu.dot_dimension_numbers<[1], [0], [0], [1], [0, 0, 1, 1], [], []>} : vector<8x32xbf16>, vector<32x32xbf16>, vector<8x32xf32> -> vector<8x32xf32>
    %c0_9 = arith.constant 0 : index
    %c0_10 = arith.constant 0 : index
    %9 = vector.load %arg5[%c0_9, %c0_10] : memref<1x32xf32, #tpu.memory_space<vmem>>, vector<1x32xf32>
    %10 = vector.broadcast %9 : vector<1x32xf32> to vector<8x32xf32>
    %11 = arith.addf %8, %10 : vector<8x32xf32>
    %12 = arith.truncf %6 : vector<8x32xf32> to vector<8x32xbf16>
    %13 = arith.truncf %11 : vector<8x32xf32> to vector<8x32xbf16>
    %14 = vector.extract_strided_slice %12 {offsets = [0, 0], sizes = [8, 8], strides = [1, 1]} : vector<8x32xbf16> to vector<8x8xbf16>
    %15 = vector.extract_strided_slice %12 {offsets = [0, 8], sizes = [8, 8], strides = [1, 1]} : vector<8x32xbf16> to vector<8x8xbf16>
    %16 = vector.extract_strided_slice %12 {offsets = [0, 16], sizes = [8, 8], strides = [1, 1]} : vector<8x32xbf16> to vector<8x8xbf16>
    %17 = vector.extract_strided_slice %12 {offsets = [0, 24], sizes = [8, 8], strides = [1, 1]} : vector<8x32xbf16> to vector<8x8xbf16>
    %18 = vector.shape_cast %14 : vector<8x8xbf16> to vector<1x8x8xbf16>
    %19 = vector.shape_cast %15 : vector<8x8xbf16> to vector<1x8x8xbf16>
    %20 = vector.shape_cast %16 : vector<8x8xbf16> to vector<1x8x8xbf16>
    %21 = vector.shape_cast %17 : vector<8x8xbf16> to vector<1x8x8xbf16>
    %22 = tpu.concatenate %18, %19, %20, %21 in 0 : vector<1x8x8xbf16>, vector<1x8x8xbf16>, vector<1x8x8xbf16>, vector<1x8x8xbf16> -> vector<4x8x8xbf16>
    %c0_11 = arith.constant 0 : index
    %c0_12 = arith.constant 0 : index
    %c0_13 = arith.constant 0 : index
    %c0_14 = arith.constant 0 : index
    %23 = vector.load %arg6[%c0_11, %c0_12, %c0_13, %c0_14] : memref<1x4x8x8xbf16, #tpu.memory_space<vmem>>, vector<1x4x8x8xbf16>
    %24 = vector.shape_cast %23 : vector<1x4x8x8xbf16> to vector<4x8x8xbf16>
    %25 = vector.shape_cast %22 : vector<4x8x8xbf16> to vector<1x4x8x8xbf16>
    tpu.vector_store %arg6[%c0_11, %c0_12, %c0_13, %c0_14], %25 {strides = array<i32>} : memref<1x4x8x8xbf16, #tpu.memory_space<vmem>>, vector<1x4x8x8xbf16>,
    %26 = vector.extract_strided_slice %13 {offsets = [0, 0], sizes = [8, 8], strides = [1, 1]} : vector<8x32xbf16> to vector<8x8xbf16>
    %27 = vector.extract_strided_slice %13 {offsets = [0, 8], sizes = [8, 8], strides = [1, 1]} : vector<8x32xbf16> to vector<8x8xbf16>
    %28 = vector.extract_strided_slice %13 {offsets = [0, 16], sizes = [8, 8], strides = [1, 1]} : vector<8x32xbf16> to vector<8x8xbf16>
    %29 = vector.extract_strided_slice %13 {offsets = [0, 24], sizes = [8, 8], strides = [1, 1]} : vector<8x32xbf16> to vector<8x8xbf16>
    %30 = vector.shape_cast %26 : vector<8x8xbf16> to vector<1x8x8xbf16>
    %31 = vector.shape_cast %27 : vector<8x8xbf16> to vector<1x8x8xbf16>
    %32 = vector.shape_cast %28 : vector<8x8xbf16> to vector<1x8x8xbf16>
    %33 = vector.shape_cast %29 : vector<8x8xbf16> to vector<1x8x8xbf16>
    %34 = tpu.concatenate %30, %31, %32, %33 in 0 : vector<1x8x8xbf16>, vector<1x8x8xbf16>, vector<1x8x8xbf16>, vector<1x8x8xbf16> -> vector<4x8x8xbf16>
    %c0_15 = arith.constant 0 : index
    %c0_16 = arith.constant 0 : index
    %c0_17 = arith.constant 0 : index
    %c0_18 = arith.constant 0 : index
    %35 = vector.load %arg7[%c0_15, %c0_16, %c0_17, %c0_18] : memref<1x4x8x8xbf16, #tpu.memory_space<vmem>>, vector<1x4x8x8xbf16>
    %36 = vector.shape_cast %35 : vector<1x4x8x8xbf16> to vector<4x8x8xbf16>
    %37 = vector.shape_cast %34 : vector<4x8x8xbf16> to vector<1x4x8x8xbf16>
    tpu.vector_store %arg7[%c0_15, %c0_16, %c0_17, %c0_18], %37 {strides = array<i32>} : memref<1x4x8x8xbf16, #tpu.memory_space<vmem>>, vector<1x4x8x8xbf16>,
    return
  }
  func.func @transform_0(%arg0: i32) -> (i32, i32, i32) {
    %c0_i32 = arith.constant 0 : i32
    %c0_i32_0 = arith.constant 0 : i32
    %c0_i32_1 = arith.constant 0 : i32
    return %arg0, %c0_i32, %c0_i32_0 : i32, i32, i32
  }
  func.func @transform_1(%arg0: i32) -> (i32, i32) {
    %c0_i32 = arith.constant 0 : i32
    %c0_i32_0 = arith.constant 0 : i32
    %c0_i32_1 = arith.constant 0 : i32
    return %c0_i32, %c0_i32_0 : i32, i32
  }
  func.func @transform_2(%arg0: i32) -> (i32, i32) {
    %c0_i32 = arith.constant 0 : i32
    %c0_i32_0 = arith.constant 0 : i32
    %c0_i32_1 = arith.constant 0 : i32
    return %c0_i32, %c0_i32_0 : i32, i32
  }
  func.func @transform_3(%arg0: i32) -> (i32, i32) {
    %c0_i32 = arith.constant 0 : i32
    %c0_i32_0 = arith.constant 0 : i32
    %c0_i32_1 = arith.constant 0 : i32
    return %c0_i32, %c0_i32_0 : i32, i32
  }
  func.func @transform_4(%arg0: i32) -> (i32, i32) {
    %c0_i32 = arith.constant 0 : i32
    %c0_i32_0 = arith.constant 0 : i32
    %c0_i32_1 = arith.constant 0 : i32
    return %c0_i32, %c0_i32_0 : i32, i32
  }
  func.func @transform_5(%arg0: i32) -> (i32, i32, i32, i32) {
    %c0_i32 = arith.constant 0 : i32
    %c0_i32_0 = arith.constant 0 : i32
    %c0_i32_1 = arith.constant 0 : i32
    %c0_i32_2 = arith.constant 0 : i32
    return %arg0, %c0_i32, %c0_i32_0, %c0_i32_1 : i32, i32, i32, i32
  }
  func.func @transform_6(%arg0: i32) -> (i32, i32, i32, i32) {
    %c0_i32 = arith.constant 0 : i32
    %c0_i32_0 = arith.constant 0 : i32
    %c0_i32_1 = arith.constant 0 : i32
    %c0_i32_2 = arith.constant 0 : i32
    return %arg0, %c0_i32, %c0_i32_0, %c0_i32_1 : i32, i32, i32, i32
  }
}

</mosaic_0001>

<bundles_post_ra>
// kernel: tpu_custom_call.1
= control target key start
LH: loop header
LB: loop body
LE: loop exit
PB: predicated region body
PF: predicated region fallthrough
CT: control target
= control target key end

     0   :  { %s1131_s0 = inlined_call_operand.hbm [shape: bf16[2,8,32], index: 0, kind: input, shape index: {}]   ;;  %s1132_s1 = inlined_call_operand.hbm [shape: bf16[32,32], index: 1, kind: input, shape index: {}]   ;;  %s1133_s2 = inlined_call_operand.vmem [shape: f32[1,32], index: 2, kind: input, shape index: {}]   ;;  %s1134_s3 = inlined_call_operand.hbm [shape: bf16[32,32], index: 3, kind: input, shape index: {}]   ;;  %s1135_s4 = inlined_call_operand.vmem [shape: f32[1,32], index: 4, kind: input, shape index: {}]   ;;  %s1136_s5 = inlined_call_operand.hbm [shape: bf16[2,4,8,8], index: 5, kind: output, shape index: {0}]   ;;  %s1137_s6 = inlined_call_operand.hbm [shape: bf16[2,4,8,8], index: 6, kind: output, shape index: {1}]  }
   0x1   :  { %1138 = sst [smem:[#allocation15_spill]] %s1132_s1 }
   0x2   :  { %12 = vsyncpa [#allocation3], 0 }
   0x3   :  { %14 = vsyncpa [#allocation3 + $0x1], 0 }
   0x4   :  { %15 = vsyncpa [#allocation6], 0 }
   0x5   :  { %16 = vsyncpa [#allocation4], 0 }
   0x6   :  { %18 = vsyncpa [#allocation4 + $0x1], 0 }
   0x7   :  { %19 = vsyncpa [#allocation10], 0 }
   0x8   :  { %21 = vsyncpa [#allocation10 + $0x1], 0  ;;  %s943_s21 = smov 0   ;;  %s945_s22 = smov 0  }
   0x9   :  { %s947_s23 = smov 0   ;;  %s949_s24 = smov 0  }
   0xa LB: > { %s1139_s1 = sld [smem:[#allocation15_spill]]  ;;  %s967_s28 = sadd.s32 4294967295, %s897_s24   ;;  %s897_s24 = sphi %s949_s24, %s1150_s24   ;;  %s893_s23 = sphi %s947_s23, %s1149_s23   ;;  %s889_s22 = sphi %s945_s22, %s1148_s22   ;;  %s885_s21 = sphi %s943_s21, %s1147_s21  }
   0xb   : > { %p580_p0 = scmp.ge.s32.totalorder %s897_s24, 1  ;;  %p48_p1 = scmp.eq.s32.totalorder %s967_s28, 0 }
   0xc   : > { %p194_p2 = scmp.lt.s32.totalorder %s897_s24, 3  ;;  %s899_s30 = smov [#allocation5]  }
   0xd   : > { %s207_s7 = sshll.u32 %s899_s30, 4  ;;  %s222_s10 = sshll.u32 %s1134_s3, 4  ;;  %s208_s7 = int_to_ptr.vmem [resolvable:$true] %s207_s7  ;;  %s223_s10 = int_to_ptr.hbm [resolvable:$true] %s222_s10 }
   0xe   : > { %p972_p3 = pnand %p580_p0, %p194_p2  ;;  %s900_s11 = smov [#allocation7]  }
   0xf   : > { %s224_s12 = sshll.u32 %s900_s11, 4  ;;  %s901_s13 = smov 64   ;;  %s225_s12 = int_to_ptr.vmem [resolvable:$true] %s224_s12 }
  0x10   : > { %s205_s27 = sshll.u32 %s1139_s1, 4  ;;  %p638_p4 = pneg %p972_p3  ;;  %s206_s27 = int_to_ptr.hbm [resolvable:$true] %s205_s27 }
  0x11   : > { %s902_s14 = smov 4   ;;  %s579_s15 = sadd.s32 4294967294, %s897_s24  }
  0x12   : > { %p639_p6 = pnand %p638_p4, %p48_p1  ;;  %s986_s16 = sadd.s32 1, %s897_s24  }
  0x13   : > { %s31_s17 = ssub.s32 %s897_s24, %s986_s16  ;;  %s34_s18 = sadd.s32 1, %s893_s23 }
  0x14   : > { %641 = dma.hbm_to_vmem [thread:$0]  (!%p639_p6), %s206_s27, 256, %s208_s7, [#allocation6], %s901_s13, %s901_s13, %s902_s14  }
  0x15   : > { %644 = dma.hbm_to_vmem [thread:$0]  (!%p639_p6), %s223_s10, 256, %s225_s12, [#allocation6], %s901_s13, %s901_s13, %s902_s14  }
  0x16   : > { %p32_p7 = scmp.eq.s32.totalorder %s31_s17, 0  ;;  %p41_p8 = scmp.ne.s32.totalorder %s893_s23, %s889_s22 }
  0x17   : > { %p42_p9 = scmp.eq.s32.totalorder %s897_s24, 0  ;;  %p47_p10 = scmp.ne.s32.totalorder %s889_s22, %s885_s21 }
  0x18   : > { %s997_s19 = scalar_select %p32_p7, %s893_s23, %s34_s18  }
  0x19   : > { %p999_p11 = por %p42_p9, %p41_p8  ;;  %p1005_p12 = por %p48_p1, %p47_p10 }
  0x1a   : > { %p155_p13 = scmp.eq.s32.totalorder %s967_s28, 1  ;;  %p161_p0 = scmp.eq.s32.totalorder %s579_s15, 1 }
  0x1b   : > { %p658_p2 = scmp.lt.s32.totalorder %s897_s24, 2  ;;  %s241_s26 = sand.u32 1, %s893_s23  }
  0x1c   : > { %p1012_p4 = por %p155_p13, %p41_p8  ;;  %p1016_p6 = por %p161_p0, %p47_p10 }
  0x1d   : > { %s584_s7 = sshll.u32 %s241_s26, 2  ;;  %s585_s8 = sshll.u32 %s897_s24, 2 }
  0x1e   : > { %s249_s11 = scalar_lea.hbm %s1131_s0, %s585_s8  ;;  %s245_s12 = scalar_lea.vmem [#allocation2], %s584_s7 }
  0x1f   : > { %s253_s13 = sshll.u32 %s245_s12, 4  ;;  %s251_s14 = sshll.u32 %s249_s11, 4  ;;  %s254_s13 = int_to_ptr.vmem [resolvable:$true] %s253_s13  ;;  %s252_s14 = int_to_ptr.hbm [resolvable:$true] %s251_s14 }
  0x20   : > { %p1026_p7 = pnand %p658_p2, %p999_p11  ;;  %s242_s17 = scalar_lea.sflag [#allocation3], %s241_s26 }
  0x21   : > { %s765_s18 = sshra.s32 %s252_s14, 4  ;;  %s772_s9 = scalar_lea.hbm %s1131_s0, 8  ;;  %s766_s18 = int_to_ptr.hbm [resolvable:$true] %s765_s18 }
  0x22   : > { %s767_s1 = scalar_lea.hbm %s766_s18, 4  ;;  %p769_p9 = pneg %p1026_p7 }
  0x23   : > { %p768_p8 = scmp.ne.s32.totalorder %s766_s18, %s767_s1  ;;  %p773_p11 = scmp.lt.s32.totalorder %s766_s18, %s1131_s0 }
  0x24   : > { %p774_p0 = scmp.lt.s32.totalorder %s772_s9, %s767_s1 }
  0x25   : > { %p770_p10 = pnand %p769_p9, %p768_p8 }
  0x26   : > { %p775_p2 = por %p774_p0, %p773_p11 }
  0x27   : > { %p771_p13 = pneg %p770_p10 }
  0x29   : > { %p776_p5 = pnand %p775_p2, %p771_p13 }
  0x2b   : > { %779 = shalt.err (!%p776_p5)
}
  0x2c   : > { %648 = dma.hbm_to_vmem [thread:$0]  (!%p1026_p7), %s252_s14, 64, %s254_s13, %s242_s17  }
  0x2d   : > { %262 = sbr.rel (%p972_p3) target bundleno = 331 (0x14b), region = 40  ;;  %s1043_s26 = sand.u32 (!%p972_p3), 1, %s889_s22  }
  0x2e   : > { %s587_s11 = sshll.u32 (!%p972_p3), %s1043_s26, 2  ;;  %s265_s12 = scalar_lea.sflag (!%p972_p3), [#allocation3], %s1043_s26 }
  0x2f   : > { %s268_s7 = scalar_lea.vmem (!%p972_p3), [#allocation2], %s587_s11 }
  0x32   : > { %868 = dma.done.wait (%p1005_p12), %s265_s12, 64  }
  0x33   : > { %870 = vsyncadd (%p1005_p12), %s265_s12, 4294967232 }
  0x34   : > { %872 = dma.done.wait (%p48_p1), [#allocation6], 512  }
  0x35   : > { %874 = vsyncadd (%p48_p1), [#allocation6], 4294966784  ;;  %v619_v0 = vld [vmem:[#allocation5 + $0x8] sm:$0xff]  ;;  %v621_v1 = vld [vmem:[#allocation7 + $0x8] sm:$0xff]  ;;  %vm335_vm0 = vcmask 261120   ;;  %s590_s14 = sshll.u32 %s1043_s26, 4 }
  0x36   : > { %345 = vmatpush.bf16.msra.mxu0 %v619_v0  ;;  %378 = vmatpush.bf16.msra.mxu1 %v621_v1  ;;  %v618_v2 = vld [vmem:[#allocation5] sm:$0xff]  ;;  %v620_v3 = vld [vmem:[#allocation7] sm:$0xff]  ;;  %v314_v4 = vld [vmem:[%s268_s7] sm:$0xf]  ;;  %vm397_vm1 = vcmask 60416   ;;  %s1062_s15 = scalar_lea.vmem [#allocation8], %s590_s14 }
  0x37   : > { %v703_v5 = vld [vmem:[%s1133_s2] ss:$0 sm:$0xff]  ;;  %s903_s17 = smov 112   ;;  %s904_s18 = smov 104  }
  0x38   : > { %v704_v6 = vld [vmem:[%s1135_s4] ss:$0 sm:$0xff]  ;;  %s312_s8 = scalar_lea.vmem [#allocation9], %s590_s14  ;;  %s905_s9 = smov 120  }
  0x39   : > { %s622_s10 = sshll.u32 %s967_s28, 4  ;;  %s434_s7 = sshll.u32 %s1062_s15, 4  ;;  %s435_s7 = int_to_ptr.vmem [resolvable:$true] %s434_s7 }
  0x3a   : > { %346 = vmatpush.bf16.msra.mxu0 %v618_v2  ;;  %379 = vmatpush.bf16.msra.mxu1 %v620_v3  ;;  %s433_s12 = scalar_lea.hbm %s1136_s5, %s622_s10  ;;  %s451_s1 = sshll.u32 %s312_s8, 4  ;;  %s1081_s1 = int_to_ptr.vmem [resolvable:$true] %s451_s1 }
  0x3b   : > { %s450_s13 = scalar_lea.hbm %s1137_s6, %s622_s10  ;;  %s436_s28 = sshll.u32 %s433_s12, 4  ;;  %s437_s28 = int_to_ptr.hbm [resolvable:$true] %s436_s28 }
  0x3c   : > { %s453_s14 = sshll.u32 %s450_s13, 4  ;;  %s815_s11 = scalar_lea.hbm %s1136_s5, 32  ;;  %s1084_s14 = int_to_ptr.hbm [resolvable:$true] %s453_s14 }
  0x3d   : > { %600 = vmatmul.msk.bf16.vlgmr.msra.gmra.mxu0 %vm335_vm0, %v314_v4  ;;  %609 = vmatmul.msk.bf16.vlgmr.msra.gmra.mxu1 %vm335_vm0, %v314_v4 }
  0xba   : > { %v348_v7 = vpop.f32.mrf.mxu0  ;;  %v381_v8 = vpop.f32.mrf.mxu1 }
  0xbb   : > { %v349_v9 = vadd.f32 %v703_v5, %v348_v7  ;;  %v382_v10 = vadd.f32 %v704_v6, %v381_v8 }
  0xbd   : > { %v385_v11 = vpack.c.bf16 %v349_v9, %v349_v9  ;;  %v386_v12 = vpack.c.bf16 %v382_v10, %v382_v10 }
  0xbf   : > { %398 = vst.msk [vmem:[%s1062_s15] sm:$0xf] %vm397_vm1, %v385_v11  ;;  %406 = vrot.lane.b32.xlu2 %v386_v12, %s903_s17  ;;  %394 = vrot.lane.b32.xlu1 %v385_v11, %s904_s18 }
  0xc0   : > { %412 = vst.msk [vmem:[%s312_s8] sm:$0xf] %vm397_vm1, %v386_v12  ;;  %388 = vrot.lane.b32.xlu0 %v385_v11, %s905_s9 }
  0xc2   : > { %v350_v13 = vpop.f32.mrf.mxu0  ;;  %v383_v14 = vpop.f32.mrf.mxu1 }
  0xc7   : > { %409 = vrot.lane.b32.xlu2 %v386_v12, %s904_s18  ;;  %403 = vrot.lane.b32.xlu1 %v386_v12, %s905_s9  ;;  %s809_s18 = sshra.s32 %s437_s28, 4  ;;  %s810_s18 = int_to_ptr.hbm [resolvable:$true] %s809_s18 }
  0xc8   : > { %391 = vrot.lane.b32.xlu0 %v385_v11, %s903_s17  ;;  %s417_s17 = scalar_lea.sflag [#allocation4], %s1043_s26  ;;  %s811_s9 = scalar_lea.hbm %s810_s18, 16 }
  0xc9   : > { %p812_p1 = scmp.ne.s32.totalorder %s810_s18, %s811_s9  ;;  %p816_p12 = scmp.lt.s32.totalorder %s810_s18, %s1136_s5 }
  0xca   : > { %p817_p7 = scmp.lt.s32.totalorder %s815_s11, %s811_s9 }
  0xcb   : > { %p813_p3 = pnand %p812_p1, %p1012_p4 }
  0xcc   : > { %p818_p8 = por %p817_p7, %p816_p12 }
  0xcd   : > { %p814_p5 = pneg %p813_p3 }
  0xcf   : > { %p819_p9 = pnand %p818_p8, %p814_p5 }
 0x119   : > { %v407_v15 = vpop.permute.xlu2 %406 }
 0x11a   : > { %414 = vst.msk [vmem:[%s312_s8 + $0x8] sm:$0xf] %vm397_vm1, %v407_v15 }
 0x121   : > { %v410_v16 = vpop.permute.xlu2 %409 }
 0x122   : > { %415 = vst.msk [vmem:[%s312_s8 + $0xc] sm:$0xf] %vm397_vm1, %v410_v16 }
 0x131   : > { %v395_v17 = vpop.permute.xlu1 %394 }
 0x132   : > { %401 = vst.msk [vmem:[%s1062_s15 + $0xc] sm:$0xf] %vm397_vm1, %v395_v17  ;;  %v389_v18 = vpop.permute.xlu0 %388 }
 0x133   : > { %399 = vst.msk [vmem:[%s1062_s15 + $0x4] sm:$0xf] %vm397_vm1, %v389_v18 }
 0x139   : > { %v404_v19 = vpop.permute.xlu1 %403 }
 0x13a   : > { %413 = vst.msk [vmem:[%s312_s8 + $0x4] sm:$0xf] %vm397_vm1, %v404_v19  ;;  %v392_v20 = vpop.permute.xlu0 %391 }
 0x13b   : > { %400 = vst.msk [vmem:[%s1062_s15 + $0x8] sm:$0xf] %vm397_vm1, %v392_v20 }
 0x13c   : > { %822 = shalt.err (!%p819_p9)
}
 0x13d   : > { %s906_s15 = smov 64   ;;  %s907_s8 = smov 4  }
 0x13e   : > { %634 = dma.vmem_to_hbm [thread:$0]  (%p1012_p4), %s435_s7, 256, %s437_s28, %s417_s17, %s906_s15, %s906_s15, %s907_s8  }
 0x13f   : > { %s422_s25 = scalar_lea.sflag [#allocation10], %s1043_s26  ;;  %s837_s13 = sshra.s32 %s1084_s14, 4  ;;  %s838_s13 = int_to_ptr.hbm [resolvable:$true] %s837_s13 }
 0x140   : > { %s839_s10 = scalar_lea.hbm %s838_s13, 16  ;;  %s843_s20 = scalar_lea.hbm %s1137_s6, 32 }
 0x141   : > { %p840_p10 = scmp.ne.s32.totalorder %s838_s13, %s839_s10  ;;  %p844_p0 = scmp.lt.s32.totalorder %s838_s13, %s1137_s6 }
 0x142   : > { %p845_p2 = scmp.lt.s32.totalorder %s843_s20, %s839_s10 }
 0x143   : > { %p841_p13 = pnand %p840_p10, %p1012_p4 }
 0x144   : > { %p846_p1 = por %p845_p2, %p844_p0 }
 0x145   : > { %p842_p11 = pneg %p841_p13 }
 0x147   : > { %p847_p3 = pnand %p846_p1, %p842_p11 }
 0x149   : > { %850 = shalt.err (!%p847_p3)
}
 0x14a   : > { %635 = dma.vmem_to_hbm [thread:$0]  (%p1012_p4), %s1081_s1, 256, %s1084_s14, %s422_s25, %s906_s15, %s906_s15, %s907_s8  }
 0x14b PF: > { %s468_s26 = sand.u32 1, %s885_s21   ;;  %p1146_p5 = scmp.ge.s32.totalorder %s897_s24, 2 }
 0x14c   : > { %s469_s7 = scalar_lea.sflag [#allocation4], %s468_s26 }
 0x14d   : > { %p650_p12 = pnand %p1146_p5, %p1016_p6 }
 0x14f   : > { %p651_p7 = pneg %p650_p12 }
 0x151   : > { %876 = dma.done.wait (%p651_p7), %s469_s7, 256  }
 0x152   : > { %878 = vsyncadd (%p651_p7), %s469_s7, 4294967040  ;;  %s479_s28 = scalar_lea.sflag [#allocation10], %s468_s26 }
 0x153   : > { %880 = dma.done.wait (%p651_p7), %s479_s28, 256  }
 0x154   : > { %882 = vsyncadd (%p651_p7), %s479_s28, 4294967040  ;;  %p24_p4 = scmp.ge.s32.totalorder %s986_s16, 4   ;;  %s1147_s21 = smov %s889_s22 }
 0x155   : > { %s1148_s22 = smov %s893_s23  ;;  %s1149_s23 = smov %s997_s19 }
 0x156   : > { %s1150_s24 = smov %s986_s16  ;;  %26 = sbr.rel (!%p24_p4) target bundleno = 10 (0xa), region = 110 }
 0x15b   :  { %485 = vsyncpa [#allocation3], 1 }
 0x15c   :  { %487 = vsyncpa [#allocation3 + $0x1], 1 }
 0x15d   :  { %488 = vsyncpa [#allocation6], 1 }
 0x15e   :  { %489 = vsyncpa [#allocation4], 1 }
 0x15f   :  { %491 = vsyncpa [#allocation4 + $0x1], 1 }
 0x160   :  { %492 = vsyncpa [#allocation10], 1 }
 0x161   :  { %494 = vsyncpa [#allocation10 + $0x1], 1 }

// kernel: tpu_custom_call.1
= control target key start
LH: loop header
LB: loop body
LE: loop exit
PB: predicated region body
PF: predicated region fallthrough
CT: control target
= control target key end

     0   :  { %s1131_s0 = inlined_call_operand.hbm [shape: bf16[2,8,32], index: 0, kind: input, shape index: {}]   ;;  %s1132_s1 = inlined_call_operand.hbm [shape: bf16[32,32], index: 1, kind: input, shape index: {}]   ;;  %s1133_s2 = inlined_call_operand.vmem [shape: f32[1,32], index: 2, kind: input, shape index: {}]   ;;  %s1134_s3 = inlined_call_operand.hbm [shape: bf16[32,32], index: 3, kind: input, shape index: {}]   ;;  %s1135_s4 = inlined_call_operand.vmem [shape: f32[1,32], index: 4, kind: input, shape index: {}]   ;;  %s1136_s5 = inlined_call_operand.hbm [shape: bf16[2,4,8,8], index: 5, kind: output, shape index: {0}]   ;;  %s1137_s6 = inlined_call_operand.hbm [shape: bf16[2,4,8,8], index: 6, kind: output, shape index: {1}]  }
   0x1   :  { %1138 = sst [smem:[#allocation15_spill]] %s1132_s1 }
   0x2   :  { %12 = vsyncpa [#allocation3], 0 }
   0x3   :  { %14 = vsyncpa [#allocation3 + $0x1], 0 }
   0x4   :  { %15 = vsyncpa [#allocation6], 0 }
   0x5   :  { %16 = vsyncpa [#allocation4], 0 }
   0x6   :  { %18 = vsyncpa [#allocation4 + $0x1], 0 }
   0x7   :  { %19 = vsyncpa [#allocation10], 0 }
   0x8   :  { %21 = vsyncpa [#allocation10 + $0x1], 0  ;;  %s943_s21 = smov 0   ;;  %s945_s22 = smov 0  }
   0x9   :  { %s947_s23 = smov 0   ;;  %s949_s24 = smov 0  }
   0xa LB: > { %s1139_s1 = sld [smem:[#allocation15_spill]]  ;;  %s967_s28 = sadd.s32 4294967295, %s897_s24   ;;  %s897_s24 = sphi %s949_s24, %s1150_s24   ;;  %s893_s23 = sphi %s947_s23, %s1149_s23   ;;  %s889_s22 = sphi %s945_s22, %s1148_s22   ;;  %s885_s21 = sphi %s943_s21, %s1147_s21  }
   0xb   : > { %p580_p0 = scmp.ge.s32.totalorder %s897_s24, 1  ;;  %p48_p1 = scmp.eq.s32.totalorder %s967_s28, 0 }
   0xc   : > { %p194_p2 = scmp.lt.s32.totalorder %s897_s24, 3  ;;  %s899_s30 = smov [#allocation5]  }
   0xd   : > { %s207_s7 = sshll.u32 %s899_s30, 4  ;;  %s222_s10 = sshll.u32 %s1134_s3, 4  ;;  %s208_s7 = int_to_ptr.vmem [resolvable:$true] %s207_s7  ;;  %s223_s10 = int_to_ptr.hbm [resolvable:$true] %s222_s10 }
   0xe   : > { %p972_p3 = pnand %p580_p0, %p194_p2  ;;  %s900_s11 = smov [#allocation7]  }
   0xf   : > { %s224_s12 = sshll.u32 %s900_s11, 4  ;;  %s901_s13 = smov 64   ;;  %s225_s12 = int_to_ptr.vmem [resolvable:$true] %s224_s12 }
  0x10   : > { %s205_s27 = sshll.u32 %s1139_s1, 4  ;;  %p638_p4 = pneg %p972_p3  ;;  %s206_s27 = int_to_ptr.hbm [resolvable:$true] %s205_s27 }
  0x11   : > { %s902_s14 = smov 4   ;;  %s579_s15 = sadd.s32 4294967294, %s897_s24  }
  0x12   : > { %p639_p6 = pnand %p638_p4, %p48_p1  ;;  %s986_s16 = sadd.s32 1, %s897_s24  }
  0x13   : > { %s31_s17 = ssub.s32 %s897_s24, %s986_s16  ;;  %s34_s18 = sadd.s32 1, %s893_s23 }
  0x14   : > { %641 = dma.hbm_to_vmem [thread:$0]  (!%p639_p6), %s206_s27, 256, %s208_s7, [#allocation6], %s901_s13, %s901_s13, %s902_s14  }
  0x15   : > { %644 = dma.hbm_to_vmem [thread:$0]  (!%p639_p6), %s223_s10, 256, %s225_s12, [#allocation6], %s901_s13, %s901_s13, %s902_s14  }
  0x16   : > { %p32_p7 = scmp.eq.s32.totalorder %s31_s17, 0  ;;  %p41_p8 = scmp.ne.s32.totalorder %s893_s23, %s889_s22 }
  0x17   : > { %p42_p9 = scmp.eq.s32.totalorder %s897_s24, 0  ;;  %p47_p10 = scmp.ne.s32.totalorder %s889_s22, %s885_s21 }
  0x18   : > { %s997_s19 = scalar_select %p32_p7, %s893_s23, %s34_s18  }
  0x19   : > { %p999_p11 = por %p42_p9, %p41_p8  ;;  %p1005_p12 = por %p48_p1, %p47_p10 }
  0x1a   : > { %p155_p13 = scmp.eq.s32.totalorder %s967_s28, 1  ;;  %p161_p0 = scmp.eq.s32.totalorder %s579_s15, 1 }
  0x1b   : > { %p658_p2 = scmp.lt.s32.totalorder %s897_s24, 2  ;;  %s241_s26 = sand.u32 1, %s893_s23  }
  0x1c   : > { %p1012_p4 = por %p155_p13, %p41_p8  ;;  %p1016_p6 = por %p161_p0, %p47_p10 }
  0x1d   : > { %s584_s7 = sshll.u32 %s241_s26, 2  ;;  %s585_s8 = sshll.u32 %s897_s24, 2 }
  0x1e   : > { %s249_s11 = scalar_lea.hbm %s1131_s0, %s585_s8  ;;  %s245_s12 = scalar_lea.vmem [#allocation2], %s584_s7 }
  0x1f   : > { %s253_s13 = sshll.u32 %s245_s12, 4  ;;  %s251_s14 = sshll.u32 %s249_s11, 4  ;;  %s254_s13 = int_to_ptr.vmem [resolvable:$true] %s253_s13  ;;  %s252_s14 = int_to_ptr.hbm [resolvable:$true] %s251_s14 }
  0x20   : > { %p1026_p7 = pnand %p658_p2, %p999_p11  ;;  %s242_s17 = scalar_lea.sflag [#allocation3], %s241_s26 }
  0x21   : > { %s765_s18 = sshra.s32 %s252_s14, 4  ;;  %s772_s9 = scalar_lea.hbm %s1131_s0, 8  ;;  %s766_s18 = int_to_ptr.hbm [resolvable:$true] %s765_s18 }
  0x22   : > { %s767_s1 = scalar_lea.hbm %s766_s18, 4  ;;  %p769_p9 = pneg %p1026_p7 }
  0x23   : > { %p768_p8 = scmp.ne.s32.totalorder %s766_s18, %s767_s1  ;;  %p773_p11 = scmp.lt.s32.totalorder %s766_s18, %s1131_s0 }
  0x24   : > { %p774_p0 = scmp.lt.s32.totalorder %s772_s9, %s767_s1 }
  0x25   : > { %p770_p10 = pnand %p769_p9, %p768_p8 }
  0x26   : > { %p775_p2 = por %p774_p0, %p773_p11 }
  0x27   : > { %p771_p13 = pneg %p770_p10 }
  0x29   : > { %p776_p5 = pnand %p775_p2, %p771_p13 }
  0x2b   : > { %779 = shalt.err (!%p776_p5)
}
  0x2c   : > { %648 = dma.hbm_to_vmem [thread:$0]  (!%p1026_p7), %s252_s14, 64, %s254_s13, %s242_s17  }
  0x2d   : > { %262 = sbr.rel (%p972_p3) target bundleno = 331 (0x14b), region = 40  ;;  %s1043_s26 = sand.u32 (!%p972_p3), 1, %s889_s22  }
  0x2e   : > { %s587_s11 = sshll.u32 (!%p972_p3), %s1043_s26, 2  ;;  %s265_s12 = scalar_lea.sflag (!%p972_p3), [#allocation3], %s1043_s26 }
  0x2f   : > { %s268_s7 = scalar_lea.vmem (!%p972_p3), [#allocation2], %s587_s11 }
  0x32   : > { %868 = dma.done.wait (%p1005_p12), %s265_s12, 64  }
  0x33   : > { %870 = vsyncadd (%p1005_p12), %s265_s12, 4294967232 }
  0x34   : > { %872 = dma.done.wait (%p48_p1), [#allocation6], 512  }
  0x35   : > { %874 = vsyncadd (%p48_p1), [#allocation6], 4294966784  ;;  %v619_v0 = vld [vmem:[#allocation5 + $0x8] sm:$0xff]  ;;  %v621_v1 = vld [vmem:[#allocation7 + $0x8] sm:$0xff]  ;;  %vm335_vm0 = vcmask 261120   ;;  %s590_s14 = sshll.u32 %s1043_s26, 4 }
  0x36   : > { %345 = vmatpush.bf16.msra.mxu0 %v619_v0  ;;  %378 = vmatpush.bf16.msra.mxu1 %v621_v1  ;;  %v618_v2 = vld [vmem:[#allocation5] sm:$0xff]  ;;  %v620_v3 = vld [vmem:[#allocation7] sm:$0xff]  ;;  %v314_v4 = vld [vmem:[%s268_s7] sm:$0xf]  ;;  %vm397_vm1 = vcmask 60416   ;;  %s1062_s15 = scalar_lea.vmem [#allocation8], %s590_s14 }
  0x37   : > { %v703_v5 = vld [vmem:[%s1133_s2] ss:$0 sm:$0xff]  ;;  %s903_s17 = smov 112   ;;  %s904_s18 = smov 104  }
  0x38   : > { %v704_v6 = vld [vmem:[%s1135_s4] ss:$0 sm:$0xff]  ;;  %s312_s8 = scalar_lea.vmem [#allocation9], %s590_s14  ;;  %s905_s9 = smov 120  }
  0x39   : > { %s622_s10 = sshll.u32 %s967_s28, 4  ;;  %s434_s7 = sshll.u32 %s1062_s15, 4  ;;  %s435_s7 = int_to_ptr.vmem [resolvable:$true] %s434_s7 }
  0x3a   : > { %346 = vmatpush.bf16.msra.mxu0 %v618_v2  ;;  %379 = vmatpush.bf16.msra.mxu1 %v620_v3  ;;  %s433_s12 = scalar_lea.hbm %s1136_s5, %s622_s10  ;;  %s451_s1 = sshll.u32 %s312_s8, 4  ;;  %s1081_s1 = int_to_ptr.vmem [resolvable:$true] %s451_s1 }
  0x3b   : > { %s450_s13 = scalar_lea.hbm %s1137_s6, %s622_s10  ;;  %s436_s28 = sshll.u32 %s433_s12, 4  ;;  %s437_s28 = int_to_ptr.hbm [resolvable:$true] %s436_s28 }
  0x3c   : > { %s453_s14 = sshll.u32 %s450_s13, 4  ;;  %s815_s11 = scalar_lea.hbm %s1136_s5, 32  ;;  %s1084_s14 = int_to_ptr.hbm [resolvable:$true] %s453_s14 }
  0x3d   : > { %600 = vmatmul.msk.bf16.vlgmr.msra.gmra.mxu0 %vm335_vm0, %v314_v4  ;;  %609 = vmatmul.msk.bf16.vlgmr.msra.gmra.mxu1 %vm335_vm0, %v314_v4 }
  0xba   : > { %v348_v7 = vpop.f32.mrf.mxu0  ;;  %v381_v8 = vpop.f32.mrf.mxu1 }
  0xbb   : > { %v349_v9 = vadd.f32 %v703_v5, %v348_v7  ;;  %v382_v10 = vadd.f32 %v704_v6, %v381_v8 }
  0xbd   : > { %v385_v11 = vpack.c.bf16 %v349_v9, %v349_v9  ;;  %v386_v12 = vpack.c.bf16 %v382_v10, %v382_v10 }
  0xbf   : > { %398 = vst.msk [vmem:[%s1062_s15] sm:$0xf] %vm397_vm1, %v385_v11  ;;  %406 = vrot.lane.b32.xlu2 %v386_v12, %s903_s17  ;;  %394 = vrot.lane.b32.xlu1 %v385_v11, %s904_s18 }
  0xc0   : > { %412 = vst.msk [vmem:[%s312_s8] sm:$0xf] %vm397_vm1, %v386_v12  ;;  %388 = vrot.lane.b32.xlu0 %v385_v11, %s905_s9 }
  0xc2   : > { %v350_v13 = vpop.f32.mrf.mxu0  ;;  %v383_v14 = vpop.f32.mrf.mxu1 }
  0xc7   : > { %409 = vrot.lane.b32.xlu2 %v386_v12, %s904_s18  ;;  %403 = vrot.lane.b32.xlu1 %v386_v12, %s905_s9  ;;  %s809_s18 = sshra.s32 %s437_s28, 4  ;;  %s810_s18 = int_to_ptr.hbm [resolvable:$true] %s809_s18 }
  0xc8   : > { %391 = vrot.lane.b32.xlu0 %v385_v11, %s903_s17  ;;  %s417_s17 = scalar_lea.sflag [#allocation4], %s1043_s26  ;;  %s811_s9 = scalar_lea.hbm %s810_s18, 16 }
  0xc9   : > { %p812_p1 = scmp.ne.s32.totalorder %s810_s18, %s811_s9  ;;  %p816_p12 = scmp.lt.s32.totalorder %s810_s18, %s1136_s5 }
  0xca   : > { %p817_p7 = scmp.lt.s32.totalorder %s815_s11, %s811_s9 }
  0xcb   : > { %p813_p3 = pnand %p812_p1, %p1012_p4 }
  0xcc   : > { %p818_p8 = por %p817_p7, %p816_p12 }
  0xcd   : > { %p814_p5 = pneg %p813_p3 }
  0xcf   : > { %p819_p9 = pnand %p818_p8, %p814_p5 }
 0x119   : > { %v407_v15 = vpop.permute.xlu2 %406 }
 0x11a   : > { %414 = vst.msk [vmem:[%s312_s8 + $0x8] sm:$0xf] %vm397_vm1, %v407_v15 }
 0x121   : > { %v410_v16 = vpop.permute.xlu2 %409 }
 0x122   : > { %415 = vst.msk [vmem:[%s312_s8 + $0xc] sm:$0xf] %vm397_vm1, %v410_v16 }
 0x131   : > { %v395_v17 = vpop.permute.xlu1 %394 }
 0x132   : > { %401 = vst.msk [vmem:[%s1062_s15 + $0xc] sm:$0xf] %vm397_vm1, %v395_v17  ;;  %v389_v18 = vpop.permute.xlu0 %388 }
 0x133   : > { %399 = vst.msk [vmem:[%s1062_s15 + $0x4] sm:$0xf] %vm397_vm1, %v389_v18 }
 0x139   : > { %v404_v19 = vpop.permute.xlu1 %403 }
 0x13a   : > { %413 = vst.msk [vmem:[%s312_s8 + $0x4] sm:$0xf] %vm397_vm1, %v404_v19  ;;  %v392_v20 = vpop.permute.xlu0 %391 }
 0x13b   : > { %400 = vst.msk [vmem:[%s1062_s15 + $0x8] sm:$0xf] %vm397_vm1, %v392_v20 }
 0x13c   : > { %822 = shalt.err (!%p819_p9)
}
 0x13d   : > { %s906_s15 = smov 64   ;;  %s907_s8 = smov 4  }
 0x13e   : > { %634 = dma.vmem_to_hbm [thread:$0]  (%p1012_p4), %s435_s7, 256, %s437_s28, %s417_s17, %s906_s15, %s906_s15, %s907_s8  }
 0x13f   : > { %s422_s25 = scalar_lea.sflag [#allocation10], %s1043_s26  ;;  %s837_s13 = sshra.s32 %s1084_s14, 4  ;;  %s838_s13 = int_to_ptr.hbm [resolvable:$true] %s837_s13 }
 0x140   : > { %s839_s10 = scalar_lea.hbm %s838_s13, 16  ;;  %s843_s20 = scalar_lea.hbm %s1137_s6, 32 }
 0x141   : > { %p840_p10 = scmp.ne.s32.totalorder %s838_s13, %s839_s10  ;;  %p844_p0 = scmp.lt.s32.totalorder %s838_s13, %s1137_s6 }
 0x142   : > { %p845_p2 = scmp.lt.s32.totalorder %s843_s20, %s839_s10 }
 0x143   : > { %p841_p13 = pnand %p840_p10, %p1012_p4 }
 0x144   : > { %p846_p1 = por %p845_p2, %p844_p0 }
 0x145   : > { %p842_p11 = pneg %p841_p13 }
 0x147   : > { %p847_p3 = pnand %p846_p1, %p842_p11 }
 0x149   : > { %850 = shalt.err (!%p847_p3)
}
 0x14a   : > { %635 = dma.vmem_to_hbm [thread:$0]  (%p1012_p4), %s1081_s1, 256, %s1084_s14, %s422_s25, %s906_s15, %s906_s15, %s907_s8  }
 0x14b PF: > { %s468_s26 = sand.u32 1, %s885_s21   ;;  %p1146_p5 = scmp.ge.s32.totalorder %s897_s24, 2 }
 0x14c   : > { %s469_s7 = scalar_lea.sflag [#allocation4], %s468_s26 }
 0x14d   : > { %p650_p12 = pnand %p1146_p5, %p1016_p6 }
 0x14f   : > { %p651_p7 = pneg %p650_p12 }
 0x151   : > { %876 = dma.done.wait (%p651_p7), %s469_s7, 256  }
 0x152   : > { %878 = vsyncadd (%p651_p7), %s469_s7, 4294967040  ;;  %s479_s28 = scalar_lea.sflag [#allocation10], %s468_s26 }
 0x153   : > { %880 = dma.done.wait (%p651_p7), %s479_s28, 256  }
 0x154   : > { %882 = vsyncadd (%p651_p7), %s479_s28, 4294967040  ;;  %p24_p4 = scmp.ge.s32.totalorder %s986_s16, 4   ;;  %s1147_s21 = smov %s889_s22 }
 0x155   : > { %s1148_s22 = smov %s893_s23  ;;  %s1149_s23 = smov %s997_s19 }
 0x156   : > { %s1150_s24 = smov %s986_s16  ;;  %26 = sbr.rel (!%p24_p4) target bundleno = 10 (0xa), region = 110 }
 0x15b   :  { %485 = vsyncpa [#allocation3], 1 }
 0x15c   :  { %487 = vsyncpa [#allocation3 + $0x1], 1 }
 0x15d   :  { %488 = vsyncpa [#allocation6], 1 }
 0x15e   :  { %489 = vsyncpa [#allocation4], 1 }
 0x15f   :  { %491 = vsyncpa [#allocation4 + $0x1], 1 }
 0x160   :  { %492 = vsyncpa [#allocation10], 1 }
 0x161   :  { %494 = vsyncpa [#allocation10 + $0x1], 1 }

</bundles_post_ra>
